<compile_context>
chip_gen: v7x
topology: tpu7x:2x2x1
jax: 0.10.0
libtpu: 0.0.40
codegen_flags: <defaults>
</compile_context>

<pallas_src>
import functools

import jax
import jax.numpy as jnp
from jax.experimental import pallas as pl
from jax.experimental.pallas import tpu as pltpu

NUM_BOND_TYPE = 6
NUM_BOND_DIRECTION = 3
NUM_ATOM_TYPE = 120
NUM_CHIRALITY_TAG = 3
BN_EPS = 1e-5
LANE = 128
SUBLANE = 8


def _round_up(v, m):
    return ((v + m - 1) // m) * m


# ----------------------------------------------------------------------------
# Kernel 1: neighbor-aggregate + modulated GIN MLP + masked partial BN stats
# ----------------------------------------------------------------------------
def gin_mlp_kernel(a_ref, x_ref, eagg_ref, w0_ref, b0_ref, w1_ref, b1_ref,
                   h_ref, stats_ref, *, n_valid, tn):
    i = pl.program_id(0)
    # aggregation: agg[v] = sum_{e: tgt(e)=v} x[src(e)]  + sum edge_emb[e]
    agg = jnp.dot(a_ref[...], x_ref[...],
                  preferred_element_type=jnp.float32) + eagg_ref[...]   # [tn, Dp] f32
    # modulated GIN MLP: Linear(D,2D) -> ReLU -> Linear(2D,D)  (bf16 MXU, f32 acc)
    h = jnp.dot(agg.astype(jnp.bfloat16), w0_ref[...],
                preferred_element_type=jnp.float32) + b0_ref[...]       # [tn, 2Dp]
    h = jnp.maximum(h, 0.0)
    h = jnp.dot(h.astype(jnp.bfloat16), w1_ref[...],
                preferred_element_type=jnp.float32) + b1_ref[...]       # [tn, Dp]
    h_ref[...] = h
    # masked partial BatchNorm statistics (exclude padded rows)
    row = jax.lax.broadcasted_iota(jnp.int32, (tn, 1), 0) + i * tn
    valid = (row < n_valid).astype(jnp.float32)
    hm = h * valid
    s = jnp.sum(hm, axis=0, keepdims=True)                              # [1, Dp]
    ss = jnp.sum(hm * hm, axis=0, keepdims=True)                        # [1, Dp]
    pad = jnp.zeros((SUBLANE - 2, h.shape[1]), jnp.float32)
    stats_ref[...] = jnp.concatenate([s, ss, pad], axis=0)[None]        # [1, 8, Dp]


# ----------------------------------------------------------------------------
# Kernel 2: BatchNorm (batch stats, gamma=1, beta=0) + optional ReLU
# ----------------------------------------------------------------------------
def bn_relu_kernel(h_ref, mean_ref, rstd_ref, o_ref, *, n_valid, tn, apply_relu):
    i = pl.program_id(0)
    h = (h_ref[...] - mean_ref[...]) * rstd_ref[...]
    if apply_relu:
        h = jnp.maximum(h, 0.0)
    # keep padded rows exactly zero so downstream pooling / next layer is clean
    row = jax.lax.broadcasted_iota(jnp.int32, (tn, 1), 0) + i * tn
    o_ref[...] = jnp.where(row < n_valid, h, 0.0)


# ----------------------------------------------------------------------------
# Per-layer wrapper: pad to lane/sublane-aligned shapes, tile the node axis
# ----------------------------------------------------------------------------
def gin_layer(x, adj, edge_agg, w0, b0, w1, b1, apply_relu):
    n, d = x.shape
    d2 = w0.shape[1]
    dp = _round_up(d, LANE)
    d2p = _round_up(d2, LANE)
    np0 = _round_up(n, SUBLANE)
    tn = min(256, np0)                      # node tile (halve further for huge D)
    npad = _round_up(np0, tn)
    num_tiles = npad // tn

    def pad2(a, r, c):
        return jnp.pad(a, ((0, r - a.shape[0]), (0, c - a.shape[1])))

    x_p = pad2(x, npad, dp).astype(jnp.bfloat16)
    a_p = pad2(adj, npad, npad).astype(jnp.bfloat16)      # 0/1/int counts: exact in bf16
    e_p = pad2(edge_agg, npad, dp).astype(jnp.float32)
    w0_p = pad2(w0, dp, d2p).astype(jnp.bfloat16)
    w1_p = pad2(w1, d2p, dp).astype(jnp.bfloat16)
    b0_p = jnp.pad(b0, ((0, 0), (0, d2p - d2))).astype(jnp.float32)
    b1_p = jnp.pad(b1, ((0, 0), (0, dp - d))).astype(jnp.float32)

    flops = 2 * npad * npad * dp + 2 * npad * dp * d2p + 2 * npad * d2p * dp
    bytes_accessed = ((a_p.size + x_p.size + w0_p.size + w1_p.size) * 2
                      + (e_p.size + b0_p.size + b1_p.size) * 4
                      + npad * dp * 4 + num_tiles * SUBLANE * dp * 4)

    h_pre, stats = pl.pallas_call(
        functools.partial(gin_mlp_kernel, n_valid=n, tn=tn),
        grid=(num_tiles,),
        in_specs=[
            pl.BlockSpec((tn, npad), lambda i: (i, 0)),        # A row tile
            pl.BlockSpec((npad, dp), lambda i: (0, 0)),        # x (resident block)
            pl.BlockSpec((tn, dp), lambda i: (i, 0)),          # edge_agg tile
            pl.BlockSpec((dp, d2p), lambda i: (0, 0)),         # w0 (resident)
            pl.BlockSpec((1, d2p), lambda i: (0, 0)),          # b0
            pl.BlockSpec((d2p, dp), lambda i: (0, 0)),         # w1 (resident)
            pl.BlockSpec((1, dp), lambda i: (0, 0)),           # b1
        ],
        out_specs=(
            pl.BlockSpec((tn, dp), lambda i: (i, 0)),               # h_pre
            pl.BlockSpec((1, SUBLANE, dp), lambda i: (i, 0, 0)),    # partial stats
        ),
        out_shape=(
            jax.ShapeDtypeStruct((npad, dp), jnp.float32),
            jax.ShapeDtypeStruct((num_tiles, SUBLANE, dp), jnp.float32),
        ),
        compiler_params=pltpu.CompilerParams(
            dimension_semantics=("parallel",),
            vmem_limit_bytes=48 * 1024 * 1024),
        cost_estimate=pl.CostEstimate(flops=flops, transcendentals=0,
                                      bytes_accessed=bytes_accessed),
    )(a_p, x_p, e_p, w0_p, b0_p, w1_p, b1_p)

    # cross-tile BN statistics (tiny reduction in glue; biased batch variance)
    tot = jnp.sum(stats, axis=0)                         # [8, Dp]
    mean = tot[0] / n
    var = jnp.maximum(tot[1] / n - mean * mean, 0.0)
    rstd = jax.lax.rsqrt(var + BN_EPS)
    mean = mean.reshape(1, dp)
    rstd = rstd.reshape(1, dp)

    h = pl.pallas_call(
        functools.partial(bn_relu_kernel, n_valid=n, tn=tn, apply_relu=apply_relu),
        grid=(num_tiles,),
        in_specs=[
            pl.BlockSpec((tn, dp), lambda i: (i, 0)),
            pl.BlockSpec((1, dp), lambda i: (0, 0)),
            pl.BlockSpec((1, dp), lambda i: (0, 0)),
        ],
        out_specs=pl.BlockSpec((tn, dp), lambda i: (i, 0)),
        out_shape=jax.ShapeDtypeStruct((npad, dp), jnp.float32),
        compiler_params=pltpu.CompilerParams(
            dimension_semantics=("parallel",)),
    )(h_pre, mean, rstd)

    return h[:n, :d]


# ----------------------------------------------------------------------------
# Deterministic parameter init (shapes follow the PyTorch module __init__)
# ----------------------------------------------------------------------------
def _xavier(key, shape):
    a = (6.0 / (shape[0] + shape[-1])) ** 0.5
    return jax.random.uniform(key, shape, jnp.float32, -a, a)


def _linear(key, out_dim, in_dim):
    k1, k2 = jax.random.split(key)
    bound = 1.0 / (in_dim ** 0.5)
    w = jax.random.uniform(k1, (out_dim, in_dim), jnp.float32, -bound, bound)
    b = jax.random.uniform(k2, (out_dim,), jnp.float32, -bound, bound)
    return w, b


def _predictor(key, in_dim, hidden_dim, out_dim, bias_ones):
    k1, k2 = jax.random.split(key)
    w0, b0 = _linear(k1, hidden_dim, in_dim)
    w1 = jax.random.normal(k2, (out_dim, hidden_dim), jnp.float32) * 1e-4
    b1 = (jnp.ones((out_dim,), jnp.float32) if bias_ones
          else jnp.zeros((out_dim,), jnp.float32))
    return {"w0": w0, "b0": b0, "w1": w1, "b1": b1}


def init_gin_layer(key, d):
    ks = jax.random.split(key, 12)
    h = max(d // 32, 1)
    mlp0_w, mlp0_b = _linear(ks[0], 2 * d, d)
    mlp2_w, mlp2_b = _linear(ks[1], d, 2 * d)
    return {
        "mlp0_w": mlp0_w, "mlp0_b": mlp0_b,
        "mlp2_w": mlp2_w, "mlp2_b": mlp2_b,
        "ee1_w": _xavier(ks[2], (NUM_BOND_TYPE, d)),
        "ee2_w": _xavier(ks[3], (NUM_BOND_DIRECTION, d)),
        "m_scale_0": _predictor(ks[4], 2 * d, h, 2 * d + 1, True),
        "m_shift_0": _predictor(ks[5], 2 * d, h, 2 * d + 1, False),
        "m_scale_2": _predictor(ks[6], 2 * d, h, d + 1, True),
        "m_shift_2": _predictor(ks[7], 2 * d, h, d + 1, False),
        "ee1_scale": _predictor(ks[8], 2 * d, h, d, True),
        "ee1_shift": _predictor(ks[9], 2 * d, h, d, False),
        "ee2_scale": _predictor(ks[10], 2 * d, h, d, True),
        "ee2_shift": _predictor(ks[11], 2 * d, h, d, False),
    }


def init_gnn(key, d, num_layer):
    ks = jax.random.split(key, num_layer + 2)
    return {
        "x_emb1": _xavier(ks[0], (NUM_ATOM_TYPE, d)),
        "x_emb2": _xavier(ks[1], (NUM_CHIRALITY_TAG, d)),
        "layers": [init_gin_layer(ks[2 + l], d) for l in range(num_layer)],
    }


# ----------------------------------------------------------------------------
# JAX glue: task vector, predictors, parameter modulation, graph prep
# ----------------------------------------------------------------------------
def predictor_apply(p, x):
    hid = jnp.maximum(x @ p["w0"].T + p["b0"], 0.0)           # leaky_relu(slope=0)
    return hid @ p["w1"].T + p["b1"]


def compute_task_vec(h, batch, y, num_graphs):
    onehot = (batch[:, None] == jnp.arange(num_graphs)[None, :]).astype(jnp.float32)
    counts = onehot.sum(axis=0)
    global_x = (onehot.T @ h) / counts[:, None]               # global_mean_pool
    pos = (global_x * y[:, None]).sum(axis=0) / y.sum()
    neg = (global_x * (1.0 - y)[:, None]).sum(axis=0) / (1.0 - y).sum()
    tv = jnp.concatenate([pos, neg])[None, :]                 # [1, 2D]
    norm = jnp.maximum(jnp.linalg.norm(tv, axis=-1, keepdims=True), 1e-12)
    return tv / norm


def gnn_forward(params, x_ids, edge_index, edge_attr, batch, y,
                num_graphs, num_layer):
    n = x_ids.shape[0]
    d = params["x_emb1"].shape[1]
    # atom embeddings
    h = params["x_emb1"][x_ids[:, 0]] + params["x_emb2"][x_ids[:, 1]]
    # add self loops + self-loop edge attributes ([4, 0])
    loop = jnp.arange(n, dtype=edge_index.dtype)
    ei = jnp.concatenate([edge_index, jnp.stack([loop, loop])], axis=1)
    sl_attr = jnp.concatenate(
        [jnp.full((n, 1), 4, dtype=edge_attr.dtype),
         jnp.zeros((n, 1), dtype=edge_attr.dtype)], axis=1)
    ea = jnp.concatenate([edge_attr, sl_attr], axis=0)
    # dense adjacency (built once, reused by every layer): A[i, j] = #edges j->i
    adj = jnp.zeros((n, n), jnp.float32).at[ei[1], ei[0]].add(1.0)
    # TODO(synk): adjacency is re-DMA'd per layer pallas_call; keeping it VMEM-
    # resident across layers would require fusing the (h-dependent) modulation
    # predictors into one multi-layer kernel.

    for layer in range(num_layer):
        lp = params["layers"][layer]
        tv = compute_task_vec(h, batch, y, num_graphs)
        sc0 = predictor_apply(lp["m_scale_0"], tv).T          # [2D+1, 1]
        sh0 = predictor_apply(lp["m_shift_0"], tv).T
        sc1 = predictor_apply(lp["m_scale_2"], tv).T          # [D+1, 1]
        sh1 = predictor_apply(lp["m_shift_2"], tv).T
        e1s = predictor_apply(lp["ee1_scale"], tv)            # [1, D]
        e1h = predictor_apply(lp["ee1_shift"], tv)
        e2s = predictor_apply(lp["ee2_scale"], tv)
        e2h = predictor_apply(lp["ee2_shift"], tv)
        # modulated MLP weights / biases
        w0 = lp["mlp0_w"] * sc0[:-1, :] + sh0[:-1, :]         # [2D, D]
        b0 = lp["mlp0_b"] * sc0[-1, 0] + sh0[-1, 0]           # [2D]
        w1 = lp["mlp2_w"] * sc1[:-1, :] + sh1[:-1, :]         # [D, 2D]
        b1 = lp["mlp2_b"] * sc1[-1, 0] + sh1[-1, 0]           # [D]
        # modulated edge embeddings, summed per target node (segment-sum)
        e1w = lp["ee1_w"] * e1s + e1h
        e2w = lp["ee2_w"] * e2s + e2h
        edge_emb = e1w[ea[:, 0]] + e2w[ea[:, 1]]              # [E+N, D]
        edge_agg = jnp.zeros((n, d), jnp.float32).at[ei[1]].add(edge_emb)

        apply_relu = layer != num_layer - 1
        h = gin_layer(h, adj, edge_agg,
                      w0.T, b0[None, :], w1.T, b1[None, :], apply_relu)
    return h                                                  # JK='last'


# ----------------------------------------------------------------------------
if __name__ == "__main__":
    key = jax.random.PRNGKey(0)
    emb_dim = 32
    num_layer = 2
    n_nodes, n_edges, n_graphs = 8, 12, 2

    k_par, k_at, k_ch, k_e1, k_e2, k_e3, k_e4, k_b1, k_b2 = jax.random.split(key, 9)

    params = init_gnn(k_par, emb_dim, num_layer)

    x_ids = jnp.stack(
        [jax.random.randint(k_at, (n_nodes,), 0, NUM_ATOM_TYPE),
         jax.random.randint(k_ch, (n_nodes,), 0, NUM_CHIRALITY_TAG)], axis=1
    ).astype(jnp.int32)                                       # [8, 2]

    # edges kept within each of the 2 graphs (nodes 0-3 and 4-7)
    src = jnp.concatenate([jax.random.randint(k_e1, (6,), 0, 4),
                           jax.random.randint(k_e3, (6,), 4, 8)])
    dst = jnp.concatenate([jax.random.randint(k_e2, (6,), 0, 4),
                           jax.random.randint(k_e4, (6,), 4, 8)])
    edge_index = jnp.stack([src, dst]).astype(jnp.int32)      # [2, 12]

    edge_attr = jnp.stack(
        [jax.random.randint(k_b1, (n_edges,), 0, NUM_BOND_TYPE),
         jax.random.randint(k_b2, (n_edges,), 0, NUM_BOND_DIRECTION)], axis=1
    ).astype(jnp.int32)                                       # [12, 2]

    batch = jnp.array([0, 0, 0, 0, 1, 1, 1, 1], dtype=jnp.int32)
    y = jnp.array([1.0, 0.0], dtype=jnp.float32)

    out = gnn_forward(params, x_ids, edge_index, edge_attr, batch, y,
                      n_graphs, num_layer)
    jax.block_until_ready(out)
    assert out.shape == (n_nodes, emb_dim)
    # TODO(synk): BatchNorm running-stat buffers are not materialized; training-
    # mode batch statistics are used, matching a fresh module in train().
    print("KERNEL_OK")
</pallas_src>

<mosaic_0001>
module attributes {stable_mosaic.version = 11 : i64} {
  func.func @gin_mlp_kernel(%arg0: i32, %arg1: memref<8x8xbf16, #tpu.memory_space<vmem>>, %arg2: memref<8x128xbf16, #tpu.memory_space<vmem>>, %arg3: memref<8x128xf32, #tpu.memory_space<vmem>>, %arg4: memref<128x128xbf16, #tpu.memory_space<vmem>>, %arg5: memref<1x128xf32, #tpu.memory_space<vmem>>, %arg6: memref<128x128xbf16, #tpu.memory_space<vmem>>, %arg7: memref<1x128xf32, #tpu.memory_space<vmem>>, %arg8: memref<8x128xf32, #tpu.memory_space<vmem>>, %arg9: memref<1x8x128xf32, #tpu.memory_space<vmem>>) attributes {dimension_semantics = [#tpu.dimension_semantics<parallel>], iteration_bounds = array<i64: 1>, scalar_prefetch = 0 : i64, scratch_operands = 0 : i64, tpu.core_type = #tpu.core_type<tc>, window_params = [{transform_indices = @transform_0, window_bounds = array<i64: 8, 8>}, {pipeline_mode = #tpu.pipeline_mode<synchronous>, transform_indices = @transform_1, window_bounds = array<i64: 8, 128>}, {transform_indices = @transform_2, window_bounds = array<i64: 8, 128>}, {pipeline_mode = #tpu.pipeline_mode<synchronous>, transform_indices = @transform_3, window_bounds = array<i64: 128, 128>}, {pipeline_mode = #tpu.pipeline_mode<synchronous>, transform_indices = @transform_4, window_bounds = array<i64: 1, 128>}, {pipeline_mode = #tpu.pipeline_mode<synchronous>, transform_indices = @transform_5, window_bounds = array<i64: 128, 128>}, {pipeline_mode = #tpu.pipeline_mode<synchronous>, transform_indices = @transform_6, window_bounds = array<i64: 1, 128>}, {transform_indices = @transform_7, window_bounds = array<i64: 8, 128>}, {transform_indices = @transform_8, window_bounds = array<i64: 1, 8, 128>}]} {
    %c0 = arith.constant 0 : index
    %c0_0 = arith.constant 0 : index
    %0 = vector.load %arg1[%c0, %c0_0] : memref<8x8xbf16, #tpu.memory_space<vmem>>, vector<8x8xbf16>
    %c0_1 = arith.constant 0 : index
    %c0_2 = arith.constant 0 : index
    %1 = vector.load %arg2[%c0_1, %c0_2] : memref<8x128xbf16, #tpu.memory_space<vmem>>, vector<8x128xbf16>
    %cst = arith.constant dense<0.000000e+00> : vector<8x128xf32>
    %2 = tpu.matmul %0, %1, %cst {dimension_numbers = #tpu.dot_dimension_numbers<[1], [0], [0], [1], [0, 0, 1, 1], [], []>} : vector<8x8xbf16>, vector<8x128xbf16>, vector<8x128xf32> -> vector<8x128xf32>
    %c0_3 = arith.constant 0 : index
    %c0_4 = arith.constant 0 : index
    %3 = vector.load %arg3[%c0_3, %c0_4] : memref<8x128xf32, #tpu.memory_space<vmem>>, vector<8x128xf32>
    %4 = arith.addf %2, %3 : vector<8x128xf32>
    %5 = arith.truncf %4 : vector<8x128xf32> to vector<8x128xbf16>
    %c0_5 = arith.constant 0 : index
    %c0_6 = arith.constant 0 : index
    %6 = vector.load %arg4[%c0_5, %c0_6] : memref<128x128xbf16, #tpu.memory_space<vmem>>, vector<128x128xbf16>
    %cst_7 = arith.constant dense<0.000000e+00> : vector<8x128xf32>
    %7 = tpu.matmul %5, %6, %cst_7 {dimension_numbers = #tpu.dot_dimension_numbers<[1], [0], [0], [1], [0, 0, 1, 1], [], []>} : vector<8x128xbf16>, vector<128x128xbf16>, vector<8x128xf32> -> vector<8x128xf32>
    %c0_8 = arith.constant 0 : index
    %c0_9 = arith.constant 0 : index
    %8 = vector.load %arg5[%c0_8, %c0_9] : memref<1x128xf32, #tpu.memory_space<vmem>>, vector<1x128xf32>
    %9 = vector.broadcast %8 : vector<1x128xf32> to vector<8x128xf32>
    %10 = arith.addf %7, %9 : vector<8x128xf32>
    %cst_10 = arith.constant 0.000000e+00 : f32
    %11 = vector.broadcast %cst_10 : f32 to vector<8x128xf32>
    %12 = arith.maximumf %10, %11 : vector<8x128xf32>
    %13 = arith.truncf %12 : vector<8x128xf32> to vector<8x128xbf16>
    %c0_11 = arith.constant 0 : index
    %c0_12 = arith.constant 0 : index
    %14 = vector.load %arg6[%c0_11, %c0_12] : memref<128x128xbf16, #tpu.memory_space<vmem>>, vector<128x128xbf16>
    %cst_13 = arith.constant dense<0.000000e+00> : vector<8x128xf32>
    %15 = tpu.matmul %13, %14, %cst_13 {dimension_numbers = #tpu.dot_dimension_numbers<[1], [0], [0], [1], [0, 0, 1, 1], [], []>} : vector<8x128xbf16>, vector<128x128xbf16>, vector<8x128xf32> -> vector<8x128xf32>
    %c0_14 = arith.constant 0 : index
    %c0_15 = arith.constant 0 : index
    %16 = vector.load %arg7[%c0_14, %c0_15] : memref<1x128xf32, #tpu.memory_space<vmem>>, vector<1x128xf32>
    %17 = vector.broadcast %16 : vector<1x128xf32> to vector<8x128xf32>
    %18 = arith.addf %15, %17 : vector<8x128xf32>
    %c0_16 = arith.constant 0 : index
    %c0_17 = arith.constant 0 : index
    %19 = vector.load %arg8[%c0_16, %c0_17] : memref<8x128xf32, #tpu.memory_space<vmem>>, vector<8x128xf32>
    tpu.vector_store %arg8[%c0_16, %c0_17], %18 {strides = array<i32>} : memref<8x128xf32, #tpu.memory_space<vmem>>, vector<8x128xf32>,
    %20 = tpu.iota {dimensions = array<i32: 0>} : vector<8x1xi32>
    %c8_i32 = arith.constant 8 : i32
    %21 = arith.muli %arg0, %c8_i32 : i32
    %22 = vector.broadcast %21 : i32 to vector<8x1xi32>
    %23 = arith.addi %20, %22 : vector<8x1xi32>
    %c8_i32_18 = arith.constant 8 : i32
    %24 = vector.broadcast %c8_i32_18 : i32 to vector<8x1xi32>
    %25 = arith.cmpi slt, %23, %24 : vector<8x1xi32>
    %26 = arith.extui %25 : vector<8x1xi1> to vector<8x1xi32>
    %27 = arith.sitofp %26 : vector<8x1xi32> to vector<8x1xf32>
    %28 = vector.broadcast %27 : vector<8x1xf32> to vector<8x128xf32>
    %29 = arith.mulf %18, %28 : vector<8x128xf32>
    %cst_19 = arith.constant dense<0.000000e+00> : vector<128xf32>
    %30 = vector.multi_reduction <add>, %29, %cst_19 [0] : vector<8x128xf32> to vector<128xf32>
    %31 = vector.shape_cast %30 : vector<128xf32> to vector<1x128xf32>
    %32 = arith.mulf %29, %29 : vector<8x128xf32>
    %cst_20 = arith.constant dense<0.000000e+00> : vector<128xf32>
    %33 = vector.multi_reduction <add>, %32, %cst_20 [0] : vector<8x128xf32> to vector<128xf32>
    %34 = vector.shape_cast %33 : vector<128xf32> to vector<1x128xf32>
    %cst_21 = arith.constant 0.000000e+00 : f32
    %35 = vector.broadcast %cst_21 : f32 to vector<6x128xf32>
    %36 = tpu.concatenate %31, %34, %35 in 0 : vector<1x128xf32>, vector<1x128xf32>, vector<6x128xf32> -> vector<8x128xf32>
    %37 = vector.shape_cast %36 : vector<8x128xf32> to vector<1x8x128xf32>
    %c0_22 = arith.constant 0 : index
    %c0_23 = arith.constant 0 : index
    %c0_24 = arith.constant 0 : index
    %38 = vector.load %arg9[%c0_22, %c0_23, %c0_24] : memref<1x8x128xf32, #tpu.memory_space<vmem>>, vector<1x8x128xf32>
    tpu.vector_store %arg9[%c0_22, %c0_23, %c0_24], %37 {strides = array<i32>} : memref<1x8x128xf32, #tpu.memory_space<vmem>>, vector<1x8x128xf32>,
    return
  }
  func.func @transform_0(%arg0: i32) -> (i32, i32) {
    %c0_i32 = arith.constant 0 : i32
    %c0_i32_0 = arith.constant 0 : i32
    return %arg0, %c0_i32 : i32, i32
  }
  func.func @transform_1(%arg0: i32) -> (i32, i32) {
    %c0_i32 = arith.constant 0 : i32
    %c0_i32_0 = arith.constant 0 : i32
    %c0_i32_1 = arith.constant 0 : i32
    return %c0_i32, %c0_i32_0 : i32, i32
  }
  func.func @transform_2(%arg0: i32) -> (i32, i32) {
    %c0_i32 = arith.constant 0 : i32
    %c0_i32_0 = arith.constant 0 : i32
    return %arg0, %c0_i32 : i32, i32
  }
  func.func @transform_3(%arg0: i32) -> (i32, i32) {
    %c0_i32 = arith.constant 0 : i32
    %c0_i32_0 = arith.constant 0 : i32
    %c0_i32_1 = arith.constant 0 : i32
    return %c0_i32, %c0_i32_0 : i32, i32
  }
  func.func @transform_4(%arg0: i32) -> (i32, i32) {
    %c0_i32 = arith.constant 0 : i32
    %c0_i32_0 = arith.constant 0 : i32
    %c0_i32_1 = arith.constant 0 : i32
    return %c0_i32, %c0_i32_0 : i32, i32
  }
  func.func @transform_5(%arg0: i32) -> (i32, i32) {
    %c0_i32 = arith.constant 0 : i32
    %c0_i32_0 = arith.constant 0 : i32
    %c0_i32_1 = arith.constant 0 : i32
    return %c0_i32, %c0_i32_0 : i32, i32
  }
  func.func @transform_6(%arg0: i32) -> (i32, i32) {
    %c0_i32 = arith.constant 0 : i32
    %c0_i32_0 = arith.constant 0 : i32
    %c0_i32_1 = arith.constant 0 : i32
    return %c0_i32, %c0_i32_0 : i32, i32
  }
  func.func @transform_7(%arg0: i32) -> (i32, i32) {
    %c0_i32 = arith.constant 0 : i32
    %c0_i32_0 = arith.constant 0 : i32
    return %arg0, %c0_i32 : i32, i32
  }
  func.func @transform_8(%arg0: i32) -> (i32, i32, i32) {
    %c0_i32 = arith.constant 0 : i32
    %c0_i32_0 = arith.constant 0 : i32
    %c0_i32_1 = arith.constant 0 : i32
    return %arg0, %c0_i32, %c0_i32_0 : i32, i32, i32
  }
}

</mosaic_0001>

<bundles_post_ra>
// kernel: tpu_custom_call.1
= control target key start
LH: loop header
LB: loop body
LE: loop exit
PB: predicated region body
PF: predicated region fallthrough
CT: control target
= control target key end

     0   :  { %14 = vsyncpa [#allocation3], 0  ;;  %s886_s0 = inlined_call_operand.hbm [shape: bf16[8,8], index: 0, kind: input, shape index: {}]   ;;  %s887_s1 = inlined_call_operand.hbm [shape: bf16[8,128], index: 1, kind: input, shape index: {}]   ;;  %s888_s2 = inlined_call_operand.hbm [shape: f32[8,128], index: 2, kind: input, shape index: {}]   ;;  %s889_s3 = inlined_call_operand.hbm [shape: bf16[128,128], index: 3, kind: input, shape index: {}]   ;;  %s890_s4 = inlined_call_operand.vmem [shape: f32[1,128], index: 4, kind: input, shape index: {}]   ;;  %s891_s5 = inlined_call_operand.hbm [shape: bf16[128,128], index: 5, kind: input, shape index: {}]   ;;  %s892_s6 = inlined_call_operand.vmem [shape: f32[1,128], index: 6, kind: input, shape index: {}]   ;;  %s893_s7 = inlined_call_operand.hbm [shape: f32[8,128], index: 7, kind: output, shape index: {0}]   ;;  %s894_s8 = inlined_call_operand.hbm [shape: f32[1,8,128], index: 8, kind: output, shape index: {1}]  }
   0x1   :  { %15 = vsyncpa [#allocation6], 0 }
   0x2   :  { %16 = vsyncpa [#allocation9], 0 }
   0x3   :  { %17 = vsyncpa [#allocation4], 0 }
   0x4   :  { %18 = vsyncpa [#allocation13], 0  ;;  %s704_s27 = smov [#allocation5]   ;;  %s705_s29 = smov [#allocation8]  }
   0x5   :  { %s35_s28 = sshll.u32 %s704_s27, 4  ;;  %s54_s30 = sshll.u32 %s705_s29, 4  ;;  %s36_s28 = int_to_ptr.vmem [resolvable:$true] %s35_s28  ;;  %s760_s30 = int_to_ptr.vmem [resolvable:$true] %s54_s30 }
   0x6   :  { %s540_s11 = scalar_lea.hbm %s887_s1, 64 }
   0x7   :  { %p541_p0 = scmp.ne.s32.totalorder %s887_s1, %s540_s11  ;;  %p544_p1 = scmp.lt.u32.totalorder %s540_s11, %s887_s1 }
   0x9   :  { %p546_p2 = pnand %p544_p1, %p541_p0 }
   0xb   :  { %549 = shalt.err (!%p546_p2)
}
   0xc   :  { %s550_s16 = scalar_lea.vmem %s36_s28, 64  ;;  %p555_p4 = scmp.lt.s32.totalorder %s36_s28, %s36_s28 }
   0xd   :  { %p551_p3 = scmp.ne.s32.totalorder %s36_s28, %s550_s16  ;;  %p556_p5 = scmp.lt.s32.totalorder %s550_s16, %s550_s16 }
   0xf   :  { %p557_p6 = por %p556_p5, %p555_p4 }
  0x11   :  { %p558_p7 = pnand %p557_p6, %p551_p3 }
  0x13   :  { %561 = shalt.err (!%p558_p7)
}
  0x14   :  { %38 = dma.hbm_to_vmem [thread:$0]  %s887_s1, 64, %s36_s28, [#allocation6]  }
  0x15   :  { %s562_s21 = scalar_lea.hbm %s889_s3, 1024 }
  0x16   :  { %p563_p8 = scmp.ne.s32.totalorder %s889_s3, %s562_s21  ;;  %p566_p9 = scmp.lt.u32.totalorder %s562_s21, %s889_s3 }
  0x18   :  { %p568_p10 = pnand %p566_p9, %p563_p8 }
  0x1a   :  { %571 = shalt.err (!%p568_p10)
}
  0x1b   :  { %s572_s26 = scalar_lea.vmem %s760_s30, 1024  ;;  %p577_p12 = scmp.lt.s32.totalorder %s760_s30, %s760_s30 }
  0x1c   :  { %p573_p11 = scmp.ne.s32.totalorder %s760_s30, %s572_s26  ;;  %p578_p13 = scmp.lt.s32.totalorder %s572_s26, %s572_s26 }
  0x1e   :  { %p579_p0 = por %p578_p13, %p577_p12 }
  0x20   :  { %p580_p1 = pnand %p579_p0, %p573_p11 }
  0x22   :  { %583 = shalt.err (!%p580_p1)
}
  0x23   :  { %s706_s1 = smov 64   ;;  %s707_s27 = smov 4  }
  0x24   :  { %60 = dma.hbm_to_vmem [thread:$0]  %s889_s3, 1024, %s760_s30, [#allocation9], %s706_s1, %s706_s1, %s707_s27  }
  0x25   :  { %s708_s9 = smov [#allocation2]   ;;  %s709_s11 = smov [#allocation7]  }
  0x26   :  { %s25_s10 = sshll.u32 %s708_s9, 4  ;;  %s45_s12 = sshll.u32 %s709_s11, 4  ;;  %s26_s10 = int_to_ptr.vmem [resolvable:$true] %s25_s10  ;;  %s46_s12 = int_to_ptr.vmem [resolvable:$true] %s45_s12 }
  0x27   :  { %s584_s15 = scalar_lea.hbm %s886_s0, 64 }
  0x28   :  { %p585_p2 = scmp.ne.s32.totalorder %s886_s0, %s584_s15  ;;  %p588_p3 = scmp.lt.u32.totalorder %s584_s15, %s886_s0 }
  0x2a   :  { %p590_p4 = pnand %p588_p3, %p585_p2 }
  0x2c   :  { %593 = shalt.err (!%p590_p4)
}
  0x2d   :  { %s594_s3 = scalar_lea.vmem %s26_s10, 64  ;;  %p599_p6 = scmp.lt.s32.totalorder %s26_s10, %s26_s10 }
  0x2e   :  { %p595_p5 = scmp.ne.s32.totalorder %s26_s10, %s594_s3  ;;  %p600_p7 = scmp.lt.s32.totalorder %s594_s3, %s594_s3 }
  0x30   :  { %p601_p8 = por %p600_p7, %p599_p6 }
  0x32   :  { %p602_p9 = pnand %p601_p8, %p595_p5 }
  0x34   :  { %605 = shalt.err (!%p602_p9)
}
  0x35   :  { %28 = dma.hbm_to_vmem [thread:$0]  %s886_s0, 64, %s26_s10, [#allocation3]  }
  0x36   :  { %s606_s23 = scalar_lea.hbm %s888_s2, 128 }
  0x37   :  { %p607_p10 = scmp.ne.s32.totalorder %s888_s2, %s606_s23  ;;  %p610_p11 = scmp.lt.u32.totalorder %s606_s23, %s888_s2 }
  0x39   :  { %p612_p12 = pnand %p610_p11, %p607_p10 }
  0x3b   :  { %615 = shalt.err (!%p612_p12)
}
  0x3c   :  { %s616_s29 = scalar_lea.vmem %s46_s12, 128  ;;  %p621_p0 = scmp.lt.s32.totalorder %s46_s12, %s46_s12 }
  0x3d   :  { %p617_p13 = scmp.ne.s32.totalorder %s46_s12, %s616_s29  ;;  %p622_p1 = scmp.lt.s32.totalorder %s616_s29, %s616_s29 }
  0x3f   :  { %p623_p2 = por %p622_p1, %p621_p0 }
  0x41   :  { %p624_p3 = pnand %p623_p2, %p617_p13 }
  0x43   :  { %627 = shalt.err (!%p624_p3)
}
  0x44   :  { %48 = dma.hbm_to_vmem [thread:$0]  %s888_s2, 128, %s46_s12, [#allocation6]  }
  0x45   :  { %s710_s10 = smov [#allocation10]   ;;  %s628_s15 = scalar_lea.hbm %s891_s5, 1024 }
  0x46   :  { %s68_s11 = sshll.u32 %s710_s10, 4  ;;  %p629_p4 = scmp.ne.s32.totalorder %s891_s5, %s628_s15  ;;  %s69_s11 = int_to_ptr.vmem [resolvable:$true] %s68_s11 }
  0x47   :  { %p632_p5 = scmp.lt.u32.totalorder %s628_s15, %s891_s5 }
  0x49   :  { %p634_p6 = pnand %p632_p5, %p629_p4 }
  0x4b   :  { %637 = shalt.err (!%p634_p6)
}
  0x4c   :  { %s638_s3 = scalar_lea.vmem %s69_s11, 1024  ;;  %p643_p8 = scmp.lt.s32.totalorder %s69_s11, %s69_s11 }
  0x4d   :  { %p639_p7 = scmp.ne.s32.totalorder %s69_s11, %s638_s3  ;;  %p644_p9 = scmp.lt.s32.totalorder %s638_s3, %s638_s3 }
  0x4f   :  { %p645_p10 = por %p644_p9, %p643_p8 }
  0x51   :  { %p646_p11 = pnand %p645_p10, %p639_p7 }
  0x53   :  { %649 = shalt.err (!%p646_p11)
}
  0x54   :  { %74 = dma.hbm_to_vmem [thread:$0]  %s891_s5, 1024, %s69_s11, [#allocation9], %s706_s1, %s706_s1, %s707_s27  }
  0x55   :  { %694 = dma.done.wait [#allocation3], 64  }
  0x56   :  { %695 = vsyncadd [#allocation3], 4294967232 }
  0x57   :  { %696 = dma.done.wait [#allocation6], 192  }
  0x58   :  { %697 = vsyncadd [#allocation6], 4294967104 }
  0x59   :  { %698 = dma.done.wait [#allocation9], 2048  }
  0x5a   :  { %699 = vsyncadd [#allocation9], 4294965248  ;;  %v711_v0 = vmov 0.0   ;;  %vm712_vm0 = vmmov 0   ;;  %vm100_vm1 = vcmask 1043456   ;;  %vm96_vm2 = vcmask 64512  }
  0x5b   :  { %467 = vmatprep.subr.bf16.mxu0 %v711_v0  ;;  %469 = vmatprep.mubr.msk.bf16.mxu0 %vm712_vm0, %v711_v0  ;;  %v94_v1 = vld [vmem:[#allocation5] sm:$0xf]  ;;  %v524_v3 = vld [vmem:[#allocation8] sm:$0xff]   ;;  %v93_v4 = vld [vmem:[#allocation2] sm:$0xf]  ;;  %s713_s20 = smov [#allocation11]  }
  0x5c   :  { %473 = vmatprep.subr.bf16.mxu1 %v711_v0  ;;  %489 = vmatprep.mubr.msk.bf16.mxu1 %vm712_vm0, %v711_v0  ;;  %v102_v2 = vsel %vm100_vm1, %v94_v1, 0  ;;  %v525_v5 = vld [vmem:[#allocation8 + $0x8] sm:$0xff]   ;;  %v526_v6 = vld [vmem:[#allocation8 + $0x10] sm:$0xff]   ;;  %v527_v7 = vld [vmem:[#allocation8 + $0x18] sm:$0xff]   ;;  %s403_s21 = sshll.u32 %s713_s20, 4  ;;  %s404_s21 = int_to_ptr.vmem [resolvable:$true] %s403_s21 }
  0x5d   :  { %468 = vmatpush3.bf16.msra.mxu0 %v102_v2  ;;  %474 = vmatpush3.bf16.msra.mxu1 %v524_v3  ;;  %v528_v8 = vld [vmem:[#allocation8 + $0x20] sm:$0xff]   ;;  %v529_v9 = vld [vmem:[#allocation8 + $0x28] sm:$0xff]   ;;  %v530_v10 = vld [vmem:[#allocation8 + $0x30] sm:$0xff]   ;;  %p655_p13 = scmp.lt.s32.totalorder %s404_s21, %s404_s21 }
  0x5e   :  { %493 = vmatprep.subr.bf16.mxu0 %v711_v0  ;;  %475 = vmatprep.subr.bf16.mxu1 %v711_v0  ;;  %v531_v11 = vld [vmem:[#allocation8 + $0x38] sm:$0xff]   ;;  %v532_v12 = vld [vmem:[#allocation10] sm:$0xff]   ;;  %v533_v13 = vld [vmem:[#allocation10 + $0x8] sm:$0xff]  }
  0x5f   :  { %v534_v14 = vld [vmem:[#allocation10 + $0x10] sm:$0xff]   ;;  %v535_v15 = vld [vmem:[#allocation10 + $0x18] sm:$0xff]   ;;  %v536_v16 = vld [vmem:[#allocation10 + $0x20] sm:$0xff]  }
  0x60   :  { %470 = vmatmul.mubr.msk.bf16.vlgmr.msra.gmra.mrb[0].mxu0 %vm96_vm2, %v93_v4  ;;  %v537_v17 = vld [vmem:[#allocation10 + $0x28] sm:$0xff]   ;;  %v95_v18 = vld [vmem:[#allocation7] sm:$0xff]  ;;  %v538_v25 = vld [vmem:[#allocation10 + $0x30] sm:$0xff]  }
  0x61   :  { %509 = vmatprep.mubr.msk.bf16.mxu0 %vm712_vm0, %v711_v0  ;;  %476 = vmatpush3.bf16.msra.mxu1 %v525_v5  ;;  %v539_v26 = vld [vmem:[#allocation10 + $0x38] sm:$0xff]   ;;  %v429_v27 = vld [vmem:[%s890_s4] ss:$0 sm:$0xff]  ;;  %s650_s4 = scalar_lea.vmem %s404_s21, 128 }
  0x62   :  { %477 = vmatprep.subr.bf16.mxu1 %v711_v0  ;;  %494 = vmatpush3.bf16.msra.mxu0 %v532_v12  ;;  %v438_v35 = vld [vmem:[%s892_s6] ss:$0 sm:$0xff]  ;;  %p651_p12 = scmp.ne.s32.totalorder %s404_s21, %s650_s4  ;;  %p656_p0 = scmp.lt.s32.totalorder %s650_s4, %s650_s4 }
  0x63   :  { %495 = vmatprep.subr.bf16.mxu0 %v711_v0 }
  0x64   :  { %p657_p1 = por %p656_p0, %p655_p13 }
  0x65   :  { %478 = vmatpush3.bf16.msra.mxu1 %v526_v6 }
  0x66   :  { %479 = vmatprep.subr.bf16.mxu1 %v711_v0  ;;  %496 = vmatpush3.bf16.msra.mxu0 %v533_v13  ;;  %p658_p2 = pnand %p657_p1, %p651_p12 }
  0x67   :  { %497 = vmatprep.subr.bf16.mxu0 %v711_v0 }
  0x69   :  { %480 = vmatpush3.bf16.msra.mxu1 %v527_v7 }
  0x6a   :  { %481 = vmatprep.subr.bf16.mxu1 %v711_v0  ;;  %498 = vmatpush3.bf16.msra.mxu0 %v534_v14 }
  0x6b   :  { %499 = vmatprep.subr.bf16.mxu0 %v711_v0 }
  0x6d   :  { %482 = vmatpush3.bf16.msra.mxu1 %v528_v8 }
  0x6e   :  { %483 = vmatprep.subr.bf16.mxu1 %v711_v0  ;;  %500 = vmatpush3.bf16.msra.mxu0 %v535_v15 }
  0x6f   :  { %501 = vmatprep.subr.bf16.mxu0 %v711_v0 }
  0x71   :  { %484 = vmatpush3.bf16.msra.mxu1 %v529_v9 }
  0x72   :  { %485 = vmatprep.subr.bf16.mxu1 %v711_v0  ;;  %502 = vmatpush3.bf16.msra.mxu0 %v536_v16 }
  0x73   :  { %503 = vmatprep.subr.bf16.mxu0 %v711_v0 }
  0x75   :  { %486 = vmatpush3.bf16.msra.mxu1 %v530_v10 }
  0x76   :  { %487 = vmatprep.subr.bf16.mxu1 %v711_v0  ;;  %504 = vmatpush3.bf16.msra.mxu0 %v537_v17 }
  0x77   :  { %505 = vmatprep.subr.bf16.mxu0 %v711_v0 }
  0x79   :  { %488 = vmatpush3.bf16.msra.mxu1 %v531_v11 }
  0x7a   :  { %506 = vmatpush3.bf16.msra.mxu0 %v538_v25 }
  0x7b   :  { %507 = vmatprep.subr.bf16.mxu0 %v711_v0 }
  0x7e   :  { %508 = vmatpush3.bf16.msra.mxu0 %v539_v26 }
 0x133   :  { %v138_v19 = vpop.f32.mrb[0].mxu0 }
 0x134   :  { %v139_v20 = vadd.f32 %v138_v19, %v95_v18  ;;  %v471_v21 = vpop.f32.mrb[1].mxu0 }
 0x135   :  { %v141_v22 = vpop.f32.mrb[2].mxu0 }
 0x136   :  { %v144_v23 = vpack.c.bf16 %v139_v20, %v139_v20  ;;  %v472_v24 = vpop.f32.mrb[3].mxu0 }
 0x138   :  { %490 = vmatmul.mubr.bf16.vlgmr.msra.gmra.mrb[0].mxu1 %v144_v23 }
 0x20b   :  { %v250_v28 = vpop.f32.mrb[0].mxu1 }
 0x20c   :  { %v251_v29 = vadd.f32 %v429_v27, %v250_v28  ;;  %v491_v30 = vpop.f32.mrb[1].mxu1 }
 0x20d   :  { %v253_v31 = vpop.f32.mrb[2].mxu1 }
 0x20e   :  { %v256_v32 = vmax.f32 %v251_v29, 0.0  ;;  %v492_v33 = vpop.f32.mrb[3].mxu1 }
 0x210   :  { %v257_v34 = vpack.c.bf16 %v256_v32, %v256_v32 }
 0x212   :  { %510 = vmatmul.mubr.bf16.vlgmr.msra.gmra.mrb[4].mxu0 %v257_v34 }
 0x2e5   :  { %v363_v36 = vpop.f32.mrb[4].mxu0 }
 0x2e6   :  { %v364_v37 = vadd.f32 %v438_v35, %v363_v36  ;;  %v511_v38 = vpop.f32.mrb[5].mxu0 }
 0x2e7   :  { %v366_v39 = vpop.f32.mrb[6].mxu0 }
 0x2e8   :  { %v379_v40 = vrot.slane %v364_v37, 4  ;;  %v385_v41 = vmul.f32 %v364_v37, %v364_v37  ;;  %369 = vst [vmem:[#allocation11] sm:$0xff] %v364_v37  ;;  %v512_v42 = vpop.f32.mrb[7].mxu0 }
 0x2e9   :  { %661 = shalt.err (!%p658_p2)
}
 0x2ea   :  { %s662_s23 = scalar_lea.hbm %s893_s7, 128 }
 0x2eb   :  { %p663_p3 = scmp.ne.s32.totalorder %s893_s7, %s662_s23  ;;  %p666_p4 = scmp.lt.u32.totalorder %s662_s23, %s893_s7 }
 0x2ed   :  { %p668_p5 = pnand %p666_p4, %p663_p3 }
 0x2ef   :  { %671 = shalt.err (!%p668_p5)
}
 0x2f0   :  { %406 = dma.vmem_to_hbm [thread:$0]  %s404_s21, 128, %s893_s7, [#allocation4]   ;;  %v380_v43 = vadd.f32 %v379_v40, %v364_v37  ;;  %v386_v44 = vrot.slane %v385_v41, 4  ;;  %vm392_vm3 = vcmask 1040384   ;;  %vm394_vm4 = vcmask 1041408  }
 0x2f1   :  { %s714_s9 = smov [#allocation12]  }
 0x2f2   :  { %v381_v45 = vrot.slane %v380_v43, 2  ;;  %v387_v46 = vadd.f32 %v386_v44, %v385_v41  ;;  %s413_s10 = sshll.u32 %s714_s9, 4  ;;  %s414_s10 = int_to_ptr.vmem [resolvable:$true] %s413_s10 }
 0x2f3   :  { %s672_s7 = scalar_lea.vmem %s414_s10, 128  ;;  %p677_p7 = scmp.lt.s32.totalorder %s414_s10, %s414_s10 }
 0x2f4   :  { %v382_v47 = vadd.f32 %v381_v45, %v380_v43  ;;  %v388_v48 = vrot.slane %v387_v46, 2  ;;  %p673_p6 = scmp.ne.s32.totalorder %s414_s10, %s672_s7  ;;  %p678_p8 = scmp.lt.s32.totalorder %s672_s7, %s672_s7 }
 0x2f6   :  { %v383_v49 = vrot.slane %v382_v47, 1  ;;  %v389_v50 = vadd.f32 %v388_v48, %v387_v46  ;;  %p679_p9 = por %p678_p8, %p677_p7 }
 0x2f8   :  { %v390_v51 = vrot.slane %v389_v50, 1  ;;  %v384_v52 = vadd.f32 %v383_v49, %v382_v47  ;;  %p680_p10 = pnand %p679_p9, %p673_p6 }
 0x2fa   :  { %v391_v53 = vadd.f32 %v390_v51, %v389_v50 }
 0x2fc   :  { %v393_v54 = vsel %vm392_vm3, %v384_v52, %v391_v53 }
 0x2fd   :  { %v395_v55 = vsel %vm394_vm4, %v393_v54, 0.0 }
 0x2fe   :  { %396 = vst [vmem:[#allocation12] sm:$0xff] %v395_v55 }
 0x2ff   :  { %683 = shalt.err (!%p680_p10)
}
 0x300   :  { %s684_s14 = scalar_lea.hbm %s894_s8, 128 }
 0x301   :  { %p685_p11 = scmp.ne.s32.totalorder %s894_s8, %s684_s14  ;;  %p688_p12 = scmp.lt.u32.totalorder %s684_s14, %s894_s8 }
 0x303   :  { %p690_p13 = pnand %p688_p12, %p685_p11 }
 0x305   :  { %693 = shalt.err (!%p690_p13)
}
 0x306   :  { %416 = dma.vmem_to_hbm [thread:$0]  %s414_s10, 128, %s894_s8, [#allocation13]  }
 0x307   :  { %700 = dma.done.wait [#allocation4], 128  }
 0x308   :  { %701 = vsyncadd [#allocation4], 4294967168 }
 0x309   :  { %702 = dma.done.wait [#allocation13], 128  }
 0x30a   :  { %703 = vsyncadd [#allocation13], 4294967168 }
 0x30b   :  { %423 = vsyncpa [#allocation3], 1 }
 0x30c   :  { %424 = vsyncpa [#allocation6], 1 }
 0x30d   :  { %425 = vsyncpa [#allocation9], 1 }
 0x30e   :  { %426 = vsyncpa [#allocation4], 1 }
 0x30f   :  { %427 = vsyncpa [#allocation13], 1 }

</bundles_post_ra>
